<compile_context>
chip_gen: v7x
topology: tpu7x:2x2x1
jax: 0.10.0
libtpu: 0.0.40
codegen_flags: <defaults>
</compile_context>

<pallas_src>
import functools

import jax
import jax.numpy as jnp
from jax.experimental import pallas as pl
from jax.experimental.pallas import tpu as pltpu

LANE = 128      # vreg lane width  -> pad every feature dim to a multiple
SUBLANE = 8     # vreg sublane     -> pad batch to a multiple


def _round_up(n, m):
    return ((n + m - 1) // m) * m


# ----------------------------------------------------------------------------
# Fused kernel: runs EVERY layer of the MLP in one invocation.
#   refs = (x_ref, w0, b0, w1, b1, ..., o_ref)
# ----------------------------------------------------------------------------
def _fused_mlp_kernel(*refs, layer_specs, mxu_dtype):
    x_ref, o_ref = refs[0], refs[-1]
    wb = refs[1:-1]

    h = x_ref[...].astype(jnp.float32)            # (Bt, D0p): f32 master copy
    for li, (residual, act) in enumerate(layer_specs):
        w = wb[2 * li][...]                       # (Dinp, Doutp), stored in mxu_dtype
        b = wb[2 * li + 1][...]                   # (1, Doutp) f32
        # MXU consumes bf16 inputs; accumulate in f32.
        y = jnp.dot(h.astype(mxu_dtype), w, preferred_element_type=jnp.float32)
        y = y + b                                  # f32 epilogue
        if residual:                               # LinearResidualLayer: + pre-activation x
            y = y + h
        if act == "relu":
            y = jnp.maximum(y, 0.0)
        elif act == "tanh":
            y = jnp.tanh(y)
        elif act == "identity":
            pass
        else:
            raise ValueError(f"unsupported activation: {act}")
        h = y                                      # stays on-chip; no HBM round-trip
    o_ref[...] = h.astype(o_ref.dtype)             # lane-dense store (Doutp % 128 == 0)


def _fused_mlp_call(x_pad, flat_wb, layer_specs, *, batch_tile, mxu_dtype):
    Bp, d0p = x_pad.shape
    dlastp = flat_wb[-2].shape[1]
    n_tiles = Bp // batch_tile
    kernel = functools.partial(_fused_mlp_kernel,
                               layer_specs=tuple(layer_specs),
                               mxu_dtype=mxu_dtype)
    out_shape = jax.ShapeDtypeStruct((Bp, dlastp), jnp.float32)

    # Total resident VMEM here is ~O(100 KB): trivially within v7x's 64 MiB.
    if n_tiles == 1:
        # No grid: whole problem is one block, everything resident in VMEM,
        # no pipelining prologue/epilogue scaffolding.
        vmem = pl.BlockSpec(memory_space=pltpu.MemorySpace.VMEM)
        return pl.pallas_call(
            kernel,
            out_shape=out_shape,
            in_specs=[vmem] * (1 + len(flat_wb)),
            out_specs=vmem,
        )(x_pad, *flat_wb)

    # Grid over the batch only: weights/biases use a constant block index so
    # they stay resident across grid steps; batch tiles pipeline HBM<->VMEM.
    in_specs = [pl.BlockSpec((batch_tile, d0p), lambda i: (i, 0))]
    for arr in flat_wb:
        in_specs.append(pl.BlockSpec(arr.shape, lambda i: (0, 0)))
    return pl.pallas_call(
        kernel,
        out_shape=out_shape,
        grid=(n_tiles,),
        in_specs=in_specs,
        out_specs=pl.BlockSpec((batch_tile, dlastp), lambda i: (i, 0)),
        compiler_params=pltpu.CompilerParams(
            dimension_semantics=("parallel",)),   # v7x: batch split across both TCs
    )(x_pad, *flat_wb)


# ----------------------------------------------------------------------------
# MLPEncoder parameter construction (deterministic, mirrors nn.Linear init)
# ----------------------------------------------------------------------------
def make_mlp_encoder_params(key, *, channels, input_dim, Dx=1, Dy=1,
                            output_dim, layers_size):
    if channels == 1:
        input_dim_expanded = input_dim * Dx
    elif channels == 2:
        input_dim_expanded = input_dim * Dx * Dy
    else:
        raise ValueError("Not implemented.")

    sizes = [input_dim_expanded] + list(layers_size) + [output_dim]
    params = []
    for ln in range(len(sizes) - 1):
        din, dout = sizes[ln], sizes[ln + 1]
        key, kw, kb = jax.random.split(key, 3)
        bound = 1.0 / (din ** 0.5)
        # stored as (Din, Dout) == transpose of torch's (out, in) weight
        w = jax.random.uniform(kw, (din, dout), jnp.float32, -bound, bound)
        b = jax.random.uniform(kb, (1, dout), jnp.float32, -bound, bound)
        params.append({"w": w, "b": b, "residual": bool(din == dout)})
    return params


def mlp_encoder_forward(x, params, *, activation="relu",
                        activation_output="identity",
                        mxu_dtype=jnp.bfloat16):
    """x: (B, input_dim, Dx) for channels=1 (or (B, input_dim, Dx, Dy) for 2)."""
    B = x.shape[0]
    h = jnp.reshape(x, (B, -1)).astype(jnp.float32)   # MLPViewModule: .view(B, -1)
    d0 = h.shape[1]

    # Batch tile: full (padded) batch if it fits in one 128-row tile, else 128.
    Bp8 = _round_up(B, SUBLANE)
    if Bp8 <= 128:
        batch_tile, Bp = Bp8, Bp8
    else:
        batch_tile = 128   # TODO(synk): prefer 256-row tiles on v6e (2x256^2 MXU)
        Bp = _round_up(B, batch_tile)

    d0p = _round_up(d0, LANE)
    x_pad = jnp.zeros((Bp, d0p), jnp.float32).at[:B, :d0].set(h)

    # Zero-pad every layer to lane-aligned widths; weights pre-cast to bf16.
    flat_wb = []
    layer_specs = []
    n = len(params)
    din, dinp = d0, d0p
    for i, p in enumerate(params):
        dout = p["w"].shape[1]
        doutp = _round_up(dout, LANE)
        wp = (jnp.zeros((dinp, doutp), mxu_dtype)
              .at[:din, :dout].set(p["w"].astype(mxu_dtype)))
        bp = jnp.zeros((1, doutp), jnp.float32).at[:, :dout].set(p["b"])
        flat_wb += [wp, bp]
        layer_specs.append((p["residual"],
                            activation if i < n - 1 else activation_output))
        din, dinp = dout, doutp
        # Dropout(p = 1 - dropout_keep_prob) with keep_prob=1.0 -> identity.

    out_pad = _fused_mlp_call(x_pad, flat_wb, layer_specs,
                              batch_tile=batch_tile, mxu_dtype=mxu_dtype)
    return out_pad[:B, :din]


# ----------------------------------------------------------------------------
# Pure-JAX references for verification
# ----------------------------------------------------------------------------
def mlp_encoder_reference(x, params, *, activation="relu",
                          activation_output="identity", matmul_dtype=None):
    B = x.shape[0]
    h = jnp.reshape(x, (B, -1)).astype(jnp.float32)
    n = len(params)
    for i, p in enumerate(params):
        if matmul_dtype is None:
            y = jnp.dot(h, p["w"], preferred_element_type=jnp.float32)
        else:
            y = jnp.dot(h.astype(matmul_dtype), p["w"].astype(matmul_dtype),
                        preferred_element_type=jnp.float32)
        y = y + p["b"]
        if p["residual"]:
            y = y + h
        act = activation if i < n - 1 else activation_output
        if act == "relu":
            y = jnp.maximum(y, 0.0)
        elif act == "tanh":
            y = jnp.tanh(y)
        h = y
    return h


if __name__ == "__main__":
    # channels=1, input_dim=16, Dx=1, hidden layers [32, 32] (32->32 hits the
    # residual branch), output_dim=8.
    channels, input_dim, Dx, Dy = 1, 16, 1, 1
    output_dim = 8
    layers_size = [32, 32]

    key = jax.random.PRNGKey(0)
    key, kp = jax.random.split(key)
    params = make_mlp_encoder_params(
        kp, channels=channels, input_dim=input_dim, Dx=Dx, Dy=Dy,
        output_dim=output_dim, layers_size=layers_size)

    # --- small batch: single-block path (no grid) ---------------------------
    batch = 2
    key, kx = jax.random.split(key)
    x = jax.random.normal(kx, (batch, input_dim, Dx), jnp.float32)

    out = jax.block_until_ready(mlp_encoder_forward(x, params))
    assert out.shape == (batch, output_dim)

    ref_bf16 = mlp_encoder_reference(x, params, matmul_dtype=jnp.bfloat16)
    ref_f32 = mlp_encoder_reference(x, params)
    # Structural check (same bf16-MXU math as the kernel): tight tolerance.
    assert jnp.allclose(out, ref_bf16, atol=1e-4, rtol=1e-4)
    # Semantic check vs. full-f32 reference: loosened for bf16 MXU inputs.
    assert jnp.allclose(out, ref_f32, atol=2e-2, rtol=2e-2)

    # --- larger batch: batch-tiled grid path (parallel axis for v7x TCs) ----
    batch2 = 256
    key, kx2 = jax.random.split(key)
    x2 = jax.random.normal(kx2, (batch2, input_dim, Dx), jnp.float32)

    out2 = jax.block_until_ready(mlp_encoder_forward(x2, params))
    assert out2.shape == (batch2, output_dim)
    ref2 = mlp_encoder_reference(x2, params, matmul_dtype=jnp.bfloat16)
    assert jnp.allclose(out2, ref2, atol=1e-4, rtol=1e-4)

    print("KERNEL_OK")
</pallas_src>

<mosaic_0001>
module attributes {stable_mosaic.version = 11 : i64} {
  func.func @_fused_mlp_kernel(%arg0: memref<8x128xf32, #tpu.memory_space<vmem>>, %arg1: memref<128x128xbf16, #tpu.memory_space<vmem>>, %arg2: memref<1x128xf32, #tpu.memory_space<vmem>>, %arg3: memref<128x128xbf16, #tpu.memory_space<vmem>>, %arg4: memref<1x128xf32, #tpu.memory_space<vmem>>, %arg5: memref<128x128xbf16, #tpu.memory_space<vmem>>, %arg6: memref<1x128xf32, #tpu.memory_space<vmem>>, %arg7: memref<8x128xf32, #tpu.memory_space<vmem>>) attributes {dimension_semantics = [], scalar_prefetch = 0 : i64, scratch_operands = 0 : i64, tpu.core_type = #tpu.core_type<tc>} {
    %c0 = arith.constant 0 : index
    %c0_0 = arith.constant 0 : index
    %0 = vector.load %arg0[%c0, %c0_0] : memref<8x128xf32, #tpu.memory_space<vmem>>, vector<8x128xf32>
    %c0_1 = arith.constant 0 : index
    %c0_2 = arith.constant 0 : index
    %1 = vector.load %arg1[%c0_1, %c0_2] : memref<128x128xbf16, #tpu.memory_space<vmem>>, vector<128x128xbf16>
    %c0_3 = arith.constant 0 : index
    %c0_4 = arith.constant 0 : index
    %2 = vector.load %arg2[%c0_3, %c0_4] : memref<1x128xf32, #tpu.memory_space<vmem>>, vector<1x128xf32>
    %3 = arith.truncf %0 : vector<8x128xf32> to vector<8x128xbf16>
    %cst = arith.constant dense<0.000000e+00> : vector<8x128xf32>
    %4 = tpu.matmul %3, %1, %cst {dimension_numbers = #tpu.dot_dimension_numbers<[1], [0], [0], [1], [0, 0, 1, 1], [], []>} : vector<8x128xbf16>, vector<128x128xbf16>, vector<8x128xf32> -> vector<8x128xf32>
    %5 = vector.broadcast %2 : vector<1x128xf32> to vector<8x128xf32>
    %6 = arith.addf %4, %5 : vector<8x128xf32>
    %cst_5 = arith.constant 0.000000e+00 : f32
    %7 = vector.broadcast %cst_5 : f32 to vector<8x128xf32>
    %8 = arith.maximumf %6, %7 : vector<8x128xf32>
    %c0_6 = arith.constant 0 : index
    %c0_7 = arith.constant 0 : index
    %9 = vector.load %arg3[%c0_6, %c0_7] : memref<128x128xbf16, #tpu.memory_space<vmem>>, vector<128x128xbf16>
    %c0_8 = arith.constant 0 : index
    %c0_9 = arith.constant 0 : index
    %10 = vector.load %arg4[%c0_8, %c0_9] : memref<1x128xf32, #tpu.memory_space<vmem>>, vector<1x128xf32>
    %11 = arith.truncf %8 : vector<8x128xf32> to vector<8x128xbf16>
    %cst_10 = arith.constant dense<0.000000e+00> : vector<8x128xf32>
    %12 = tpu.matmul %11, %9, %cst_10 {dimension_numbers = #tpu.dot_dimension_numbers<[1], [0], [0], [1], [0, 0, 1, 1], [], []>} : vector<8x128xbf16>, vector<128x128xbf16>, vector<8x128xf32> -> vector<8x128xf32>
    %13 = vector.broadcast %10 : vector<1x128xf32> to vector<8x128xf32>
    %14 = arith.addf %12, %13 : vector<8x128xf32>
    %15 = arith.addf %14, %8 : vector<8x128xf32>
    %cst_11 = arith.constant 0.000000e+00 : f32
    %16 = vector.broadcast %cst_11 : f32 to vector<8x128xf32>
    %17 = arith.maximumf %15, %16 : vector<8x128xf32>
    %c0_12 = arith.constant 0 : index
    %c0_13 = arith.constant 0 : index
    %18 = vector.load %arg5[%c0_12, %c0_13] : memref<128x128xbf16, #tpu.memory_space<vmem>>, vector<128x128xbf16>
    %c0_14 = arith.constant 0 : index
    %c0_15 = arith.constant 0 : index
    %19 = vector.load %arg6[%c0_14, %c0_15] : memref<1x128xf32, #tpu.memory_space<vmem>>, vector<1x128xf32>
    %20 = arith.truncf %17 : vector<8x128xf32> to vector<8x128xbf16>
    %cst_16 = arith.constant dense<0.000000e+00> : vector<8x128xf32>
    %21 = tpu.matmul %20, %18, %cst_16 {dimension_numbers = #tpu.dot_dimension_numbers<[1], [0], [0], [1], [0, 0, 1, 1], [], []>} : vector<8x128xbf16>, vector<128x128xbf16>, vector<8x128xf32> -> vector<8x128xf32>
    %22 = vector.broadcast %19 : vector<1x128xf32> to vector<8x128xf32>
    %23 = arith.addf %21, %22 : vector<8x128xf32>
    %c0_17 = arith.constant 0 : index
    %c0_18 = arith.constant 0 : index
    %24 = vector.load %arg7[%c0_17, %c0_18] : memref<8x128xf32, #tpu.memory_space<vmem>>, vector<8x128xf32>
    tpu.vector_store %arg7[%c0_17, %c0_18], %23 {strides = array<i32>} : memref<8x128xf32, #tpu.memory_space<vmem>>, vector<8x128xf32>,
    return
  }
}

</mosaic_0001>

<bundles_post_ra>
// kernel: tpu_custom_call.1
= control target key start
LH: loop header
LB: loop body
LE: loop exit
PB: predicated region body
PF: predicated region fallthrough
CT: control target
= control target key end

     0   :  { %12 = vsyncpa [#allocation3], 0  ;;  %s861_s0 = inlined_call_operand.hbm [shape: f32[8,128], index: 0, kind: input, shape index: {}]   ;;  %s862_s1 = inlined_call_operand.hbm [shape: bf16[128,128], index: 1, kind: input, shape index: {}]   ;;  %s863_s2 = inlined_call_operand.vmem [shape: f32[1,128], index: 2, kind: input, shape index: {}]   ;;  %s864_s3 = inlined_call_operand.hbm [shape: bf16[128,128], index: 3, kind: input, shape index: {}]   ;;  %s865_s4 = inlined_call_operand.vmem [shape: f32[1,128], index: 4, kind: input, shape index: {}]   ;;  %s866_s5 = inlined_call_operand.hbm [shape: bf16[128,128], index: 5, kind: input, shape index: {}]   ;;  %s867_s6 = inlined_call_operand.vmem [shape: f32[1,128], index: 6, kind: input, shape index: {}]   ;;  %s868_s7 = inlined_call_operand.hbm [shape: f32[8,128], index: 7, kind: output, shape index: {}]  }
   0x1   :  { %13 = vsyncpa [#allocation6], 0 }
   0x2   :  { %14 = vsyncpa [#allocation9], 0 }
   0x3   :  { %15 = vsyncpa [#allocation4], 0  ;;  %s704_s24 = smov [#allocation5]   ;;  %s586_s28 = scalar_lea.hbm %s862_s1, 1024 }
   0x4   :  { %s31_s25 = sshll.u32 %s704_s24, 4  ;;  %p587_p0 = scmp.ne.s32.totalorder %s862_s1, %s586_s28  ;;  %s32_s25 = int_to_ptr.vmem [resolvable:$true] %s31_s25 }
   0x5   :  { %p590_p1 = scmp.lt.u32.totalorder %s586_s28, %s862_s1 }
   0x7   :  { %p592_p2 = pnand %p590_p1, %p587_p0 }
   0x9   :  { %595 = shalt.err (!%p592_p2)
}
   0xa   :  { %s596_s10 = scalar_lea.vmem %s32_s25, 1024  ;;  %p601_p4 = scmp.lt.s32.totalorder %s32_s25, %s32_s25 }
   0xb   :  { %p597_p3 = scmp.ne.s32.totalorder %s32_s25, %s596_s10  ;;  %p602_p5 = scmp.lt.s32.totalorder %s596_s10, %s596_s10 }
   0xd   :  { %p603_p6 = por %p602_p5, %p601_p4 }
   0xf   :  { %p604_p7 = pnand %p603_p6, %p597_p3 }
  0x11   :  { %607 = shalt.err (!%p604_p7)
}
  0x12   :  { %s705_s11 = smov 64   ;;  %s706_s12 = smov 4  }
  0x13   :  { %37 = dma.hbm_to_vmem [thread:$0]  %s862_s1, 1024, %s32_s25, [#allocation6], %s705_s11, %s705_s11, %s706_s12  }
  0x14   :  { %s707_s15 = smov [#allocation2]   ;;  %s708_s17 = smov [#allocation7]  }
  0x15   :  { %s22_s16 = sshll.u32 %s707_s15, 4  ;;  %s45_s18 = sshll.u32 %s708_s17, 4  ;;  %s23_s16 = int_to_ptr.vmem [resolvable:$true] %s22_s16  ;;  %s46_s18 = int_to_ptr.vmem [resolvable:$true] %s45_s18 }
  0x16   :  { %s608_s21 = scalar_lea.hbm %s861_s0, 128 }
  0x17   :  { %p609_p8 = scmp.ne.s32.totalorder %s861_s0, %s608_s21  ;;  %p612_p9 = scmp.lt.u32.totalorder %s608_s21, %s861_s0 }
  0x19   :  { %p614_p10 = pnand %p612_p9, %p609_p8 }
  0x1b   :  { %617 = shalt.err (!%p614_p10)
}
  0x1c   :  { %s618_s1 = scalar_lea.vmem %s23_s16, 128  ;;  %p623_p12 = scmp.lt.s32.totalorder %s23_s16, %s23_s16 }
  0x1d   :  { %p619_p11 = scmp.ne.s32.totalorder %s23_s16, %s618_s1  ;;  %p624_p13 = scmp.lt.s32.totalorder %s618_s1, %s618_s1 }
  0x1f   :  { %p625_p0 = por %p624_p13, %p623_p12 }
  0x21   :  { %p626_p1 = pnand %p625_p0, %p619_p11 }
  0x23   :  { %629 = shalt.err (!%p626_p1)
}
  0x24   :  { %25 = dma.hbm_to_vmem [thread:$0]  %s861_s0, 128, %s23_s16, [#allocation3]  }
  0x25   :  { %s630_s30 = scalar_lea.hbm %s864_s3, 1024 }
  0x26   :  { %p631_p2 = scmp.ne.s32.totalorder %s864_s3, %s630_s30  ;;  %p634_p3 = scmp.lt.u32.totalorder %s630_s30, %s864_s3 }
  0x28   :  { %p636_p4 = pnand %p634_p3, %p631_p2 }
  0x2a   :  { %639 = shalt.err (!%p636_p4)
}
  0x2b   :  { %s640_s14 = scalar_lea.vmem %s46_s18, 1024  ;;  %p645_p6 = scmp.lt.s32.totalorder %s46_s18, %s46_s18 }
  0x2c   :  { %p641_p5 = scmp.ne.s32.totalorder %s46_s18, %s640_s14  ;;  %p646_p7 = scmp.lt.s32.totalorder %s640_s14, %s640_s14 }
  0x2e   :  { %p647_p8 = por %p646_p7, %p645_p6 }
  0x30   :  { %p648_p9 = pnand %p647_p8, %p641_p5 }
  0x32   :  { %651 = shalt.err (!%p648_p9)
}
  0x33   :  { %51 = dma.hbm_to_vmem [thread:$0]  %s864_s3, 1024, %s46_s18, [#allocation6], %s705_s11, %s705_s11, %s706_s12  }
  0x34   :  { %s709_s16 = smov [#allocation8]   ;;  %s652_s21 = scalar_lea.hbm %s866_s5, 1024 }
  0x35   :  { %s59_s17 = sshll.u32 %s709_s16, 4  ;;  %p653_p10 = scmp.ne.s32.totalorder %s866_s5, %s652_s21  ;;  %s60_s17 = int_to_ptr.vmem [resolvable:$true] %s59_s17 }
  0x36   :  { %p656_p11 = scmp.lt.u32.totalorder %s652_s21, %s866_s5 }
  0x38   :  { %p658_p12 = pnand %p656_p11, %p653_p10 }
  0x3a   :  { %661 = shalt.err (!%p658_p12)
}
  0x3b   :  { %s662_s1 = scalar_lea.vmem %s60_s17, 1024  ;;  %p667_p0 = scmp.lt.s32.totalorder %s60_s17, %s60_s17 }
  0x3c   :  { %p663_p13 = scmp.ne.s32.totalorder %s60_s17, %s662_s1  ;;  %p668_p1 = scmp.lt.s32.totalorder %s662_s1, %s662_s1 }
  0x3e   :  { %p669_p2 = por %p668_p1, %p667_p0 }
  0x40   :  { %p670_p3 = pnand %p669_p2, %p663_p13 }
  0x42   :  { %673 = shalt.err (!%p670_p3)
}
  0x43   :  { %65 = dma.hbm_to_vmem [thread:$0]  %s866_s5, 1024, %s60_s17, [#allocation9], %s705_s11, %s705_s11, %s706_s12  }
  0x44   :  { %696 = dma.done.wait [#allocation3], 128  }
  0x45   :  { %697 = vsyncadd [#allocation3], 4294967168 }
  0x46   :  { %698 = dma.done.wait [#allocation6], 2048  }
  0x47   :  { %699 = vsyncadd [#allocation6], 4294965248 }
  0x48   :  { %700 = dma.done.wait [#allocation9], 1024  }
  0x49   :  { %701 = vsyncadd [#allocation9], 4294966272  ;;  %v710_v0 = vmov 0.0   ;;  %vm711_vm0 = vmmov 0   ;;  %v562_v1 = vld [vmem:[#allocation5] sm:$0xff]   ;;  %v563_v2 = vld [vmem:[#allocation5 + $0x8] sm:$0xff]  }
  0x4a   :  { %493 = vmatprep.subr.bf16.mxu0 %v710_v0  ;;  %509 = vmatprep.mubr.msk.bf16.mxu0 %vm711_vm0, %v710_v0  ;;  %v564_v3 = vld [vmem:[#allocation5 + $0x10] sm:$0xff]   ;;  %v570_v4 = vld [vmem:[#allocation7] sm:$0xff]   ;;  %v565_v5 = vld [vmem:[#allocation5 + $0x18] sm:$0xff]   ;;  %s712_s28 = smov [#allocation10]  }
  0x4b   :  { %513 = vmatprep.subr.bf16.mxu1 %v710_v0  ;;  %529 = vmatprep.mubr.msk.bf16.mxu1 %vm711_vm0, %v710_v0  ;;  %v571_v6 = vld [vmem:[#allocation7 + $0x8] sm:$0xff]   ;;  %v566_v7 = vld [vmem:[#allocation5 + $0x20] sm:$0xff]   ;;  %v572_v8 = vld [vmem:[#allocation7 + $0x10] sm:$0xff]   ;;  %s428_s29 = sshll.u32 %s712_s28, 4  ;;  %s429_s29 = int_to_ptr.vmem [resolvable:$true] %s428_s29 }
  0x4c   :  { %494 = vmatpush3.bf16.msra.mxu0 %v562_v1  ;;  %514 = vmatpush3.bf16.msra.mxu1 %v570_v4  ;;  %v567_v9 = vld [vmem:[#allocation5 + $0x28] sm:$0xff]   ;;  %v573_v10 = vld [vmem:[#allocation7 + $0x18] sm:$0xff]   ;;  %v568_v11 = vld [vmem:[#allocation5 + $0x30] sm:$0xff]   ;;  %p679_p5 = scmp.lt.s32.totalorder %s429_s29, %s429_s29 }
  0x4d   :  { %495 = vmatprep.subr.bf16.mxu0 %v710_v0  ;;  %515 = vmatprep.subr.bf16.mxu1 %v710_v0  ;;  %v574_v12 = vld [vmem:[#allocation7 + $0x20] sm:$0xff]   ;;  %v569_v13 = vld [vmem:[#allocation5 + $0x38] sm:$0xff]   ;;  %v575_v15 = vld [vmem:[#allocation7 + $0x28] sm:$0xff]  }
  0x4e   :  { %v81_v14 = vld [vmem:[#allocation2] sm:$0xff]  ;;  %v576_v17 = vld [vmem:[#allocation7 + $0x30] sm:$0xff]   ;;  %v578_v19 = vld [vmem:[#allocation8] sm:$0xff]  }
  0x4f   :  { %v99_v16 = vpack.c.bf16 %v81_v14, %v81_v14  ;;  %v577_v18 = vld [vmem:[#allocation7 + $0x38] sm:$0xff]   ;;  %v579_v20 = vld [vmem:[#allocation8 + $0x8] sm:$0xff]   ;;  %v580_v21 = vld [vmem:[#allocation8 + $0x10] sm:$0xff]  }
  0x50   :  { %496 = vmatpush3.bf16.msra.mxu0 %v563_v2  ;;  %516 = vmatpush3.bf16.msra.mxu1 %v571_v6  ;;  %v581_v22 = vld [vmem:[#allocation8 + $0x18] sm:$0xff]   ;;  %v582_v23 = vld [vmem:[#allocation8 + $0x20] sm:$0xff]   ;;  %v583_v24 = vld [vmem:[#allocation8 + $0x28] sm:$0xff]  }
  0x51   :  { %497 = vmatprep.subr.bf16.mxu0 %v710_v0  ;;  %517 = vmatprep.subr.bf16.mxu1 %v710_v0  ;;  %v439_v25 = vld [vmem:[%s863_s2] ss:$0 sm:$0xff]  ;;  %v584_v33 = vld [vmem:[#allocation8 + $0x30] sm:$0xff]  }
  0x52   :  { %v585_v34 = vld [vmem:[#allocation8 + $0x38] sm:$0xff]  }
  0x53   :  { %v448_v35 = vld [vmem:[%s865_s4] ss:$0 sm:$0xff]  ;;  %s674_s4 = scalar_lea.vmem %s429_s29, 128 }
  0x54   :  { %498 = vmatpush3.bf16.msra.mxu0 %v564_v3  ;;  %518 = vmatpush3.bf16.msra.mxu1 %v572_v8  ;;  %v457_v44 = vld [vmem:[%s867_s6] ss:$0 sm:$0xff]  ;;  %p675_p4 = scmp.ne.s32.totalorder %s429_s29, %s674_s4  ;;  %p680_p6 = scmp.lt.s32.totalorder %s674_s4, %s674_s4 }
  0x55   :  { %499 = vmatprep.subr.bf16.mxu0 %v710_v0  ;;  %519 = vmatprep.subr.bf16.mxu1 %v710_v0 }
  0x56   :  { %p681_p7 = por %p680_p6, %p679_p5 }
  0x58   :  { %500 = vmatpush3.bf16.msra.mxu0 %v565_v5  ;;  %520 = vmatpush3.bf16.msra.mxu1 %v573_v10  ;;  %p682_p8 = pnand %p681_p7, %p675_p4 }
  0x59   :  { %501 = vmatprep.subr.bf16.mxu0 %v710_v0  ;;  %521 = vmatprep.subr.bf16.mxu1 %v710_v0 }
  0x5c   :  { %502 = vmatpush3.bf16.msra.mxu0 %v566_v7  ;;  %522 = vmatpush3.bf16.msra.mxu1 %v574_v12 }
  0x5d   :  { %503 = vmatprep.subr.bf16.mxu0 %v710_v0  ;;  %523 = vmatprep.subr.bf16.mxu1 %v710_v0 }
  0x60   :  { %504 = vmatpush3.bf16.msra.mxu0 %v567_v9  ;;  %524 = vmatpush3.bf16.msra.mxu1 %v575_v15 }
  0x61   :  { %505 = vmatprep.subr.bf16.mxu0 %v710_v0  ;;  %525 = vmatprep.subr.bf16.mxu1 %v710_v0 }
  0x64   :  { %506 = vmatpush3.bf16.msra.mxu0 %v568_v11  ;;  %526 = vmatpush3.bf16.msra.mxu1 %v576_v17 }
  0x65   :  { %507 = vmatprep.subr.bf16.mxu0 %v710_v0  ;;  %527 = vmatprep.subr.bf16.mxu1 %v710_v0 }
  0x68   :  { %508 = vmatpush3.bf16.msra.mxu0 %v569_v13  ;;  %528 = vmatpush3.bf16.msra.mxu1 %v577_v18 }
  0x69   :  { %533 = vmatprep.subr.bf16.mxu0 %v710_v0 }
  0x6b   :  { %510 = vmatmul.mubr.bf16.vlgmr.msra.gmra.mrb[0].mxu0 %v99_v16 }
  0x6c   :  { %549 = vmatprep.mubr.msk.bf16.mxu0 %vm711_vm0, %v710_v0  ;;  %534 = vmatpush3.bf16.msra.mxu0 %v578_v19 }
  0x6d   :  { %535 = vmatprep.subr.bf16.mxu0 %v710_v0 }
  0x70   :  { %536 = vmatpush3.bf16.msra.mxu0 %v579_v20 }
  0x71   :  { %537 = vmatprep.subr.bf16.mxu0 %v710_v0 }
  0x74   :  { %538 = vmatpush3.bf16.msra.mxu0 %v580_v21 }
  0x75   :  { %539 = vmatprep.subr.bf16.mxu0 %v710_v0 }
  0x78   :  { %540 = vmatpush3.bf16.msra.mxu0 %v581_v22 }
  0x79   :  { %541 = vmatprep.subr.bf16.mxu0 %v710_v0 }
  0x7c   :  { %542 = vmatpush3.bf16.msra.mxu0 %v582_v23 }
  0x7d   :  { %543 = vmatprep.subr.bf16.mxu0 %v710_v0 }
  0x80   :  { %544 = vmatpush3.bf16.msra.mxu0 %v583_v24 }
  0x81   :  { %545 = vmatprep.subr.bf16.mxu0 %v710_v0 }
  0x84   :  { %546 = vmatpush3.bf16.msra.mxu0 %v584_v33 }
  0x85   :  { %547 = vmatprep.subr.bf16.mxu0 %v710_v0 }
  0x88   :  { %548 = vmatpush3.bf16.msra.mxu0 %v585_v34 }
 0x13e   :  { %v188_v26 = vpop.f32.mrb[0].mxu0 }
 0x13f   :  { %v189_v27 = vadd.f32 %v439_v25, %v188_v26  ;;  %v511_v28 = vpop.f32.mrb[1].mxu0 }
 0x140   :  { %v191_v29 = vpop.f32.mrb[2].mxu0 }
 0x141   :  { %v194_v30 = vmax.f32 %v189_v27, 0.0  ;;  %v512_v31 = vpop.f32.mrb[3].mxu0 }
 0x143   :  { %v212_v32 = vpack.c.bf16 %v194_v30, %v194_v30 }
 0x145   :  { %530 = vmatmul.mubr.bf16.vlgmr.msra.gmra.mrb[0].mxu1 %v212_v32 }
 0x218   :  { %v301_v36 = vpop.f32.mrb[0].mxu1 }
 0x219   :  { %v302_v37 = vadd.f32 %v448_v35, %v301_v36  ;;  %v531_v38 = vpop.f32.mrb[1].mxu1 }
 0x21a   :  { %v304_v39 = vpop.f32.mrb[2].mxu1 }
 0x21b   :  { %v307_v40 = vadd.f32 %v302_v37, %v194_v30  ;;  %v532_v41 = vpop.f32.mrb[3].mxu1 }
 0x21d   :  { %v308_v42 = vmax.f32 %v307_v40, 0.0 }
 0x21f   :  { %v326_v43 = vpack.c.bf16 %v308_v42, %v308_v42 }
 0x221   :  { %550 = vmatmul.mubr.bf16.vlgmr.msra.gmra.mrb[4].mxu0 %v326_v43 }
 0x2f4   :  { %v415_v45 = vpop.f32.mrb[4].mxu0 }
 0x2f5   :  { %v416_v46 = vadd.f32 %v457_v44, %v415_v45  ;;  %v551_v47 = vpop.f32.mrb[5].mxu0 }
 0x2f6   :  { %v418_v48 = vpop.f32.mrb[6].mxu0 }
 0x2f7   :  { %421 = vst [vmem:[#allocation10] sm:$0xff] %v416_v46  ;;  %v552_v49 = vpop.f32.mrb[7].mxu0 }
 0x2f8   :  { %685 = shalt.err (!%p682_p8)
}
 0x2f9   :  { %s686_s6 = scalar_lea.hbm %s868_s7, 128 }
 0x2fa   :  { %p687_p9 = scmp.ne.s32.totalorder %s868_s7, %s686_s6  ;;  %p690_p10 = scmp.lt.u32.totalorder %s686_s6, %s868_s7 }
 0x2fc   :  { %p692_p11 = pnand %p690_p10, %p687_p9 }
 0x2fe   :  { %695 = shalt.err (!%p692_p11)
}
 0x2ff   :  { %431 = dma.vmem_to_hbm [thread:$0]  %s429_s29, 128, %s868_s7, [#allocation4]  }
 0x300   :  { %702 = dma.done.wait [#allocation4], 128  }
 0x301   :  { %703 = vsyncadd [#allocation4], 4294967168 }
 0x302   :  { %435 = vsyncpa [#allocation3], 1 }
 0x303   :  { %436 = vsyncpa [#allocation6], 1 }
 0x304   :  { %437 = vsyncpa [#allocation9], 1 }
 0x305   :  { %438 = vsyncpa [#allocation4], 1 }

</bundles_post_ra>
